<compile_context>
chip_gen: v5e
topology: v5e:2x2
jax: 0.10.0
libtpu: 0.0.40
codegen_flags: <defaults>
</compile_context>

<pallas_src>
import math
import functools

import jax
import jax.numpy as jnp
from jax.experimental import pallas as pl
from jax.experimental.pallas import tpu as pltpu


# ----------------------------------------------------------------------------
# Kernel: one grid step == one batch element; full sequence resident in VMEM.
# ----------------------------------------------------------------------------
def _encoder_layer_kernel(
    x_ref,        # (1, S, E)  f32
    wqkv_t_ref,   # (E, 3E)    bf16  -- in_proj_weight.T, Q-cols pre-scaled
    bqkv_ref,     # (1, 3E)    f32   -- in_proj_bias, Q part pre-scaled
    wo_t_ref,     # (E, E)     bf16  -- out_proj.weight.T
    bo_ref,       # (1, E)     f32
    g1_ref,       # (1, E)     f32   -- norm1.weight
    be1_ref,      # (1, E)     f32   -- norm1.bias
    w1_t_ref,     # (E, F)     bf16  -- linear1.weight.T
    b1_ref,       # (1, F)     f32
    w2_t_ref,     # (F, E)     bf16  -- linear2.weight.T
    b2_ref,       # (1, E)     f32
    g2_ref,       # (1, E)     f32   -- norm2.weight
    be2_ref,      # (1, E)     f32   -- norm2.bias
    o_ref,        # (1, S, E)  f32
    *,
    nhead: int,
    eps: float,
):
    x = x_ref[0]                               # (S, E) f32
    S, E = x.shape
    dh = E // nhead

    # QKV projection on the MXU (bf16 in, f32 accumulate).  The 1/sqrt(dh)
    # scale is already folded into the Q columns of wqkv_t / bqkv.
    x_bf = x.astype(jnp.bfloat16)
    qkv = jnp.dot(x_bf, wqkv_t_ref[...],
                  preferred_element_type=jnp.float32) + bqkv_ref[...]  # (S, 3E)
    q = qkv[:, 0:E]
    k = qkv[:, E:2 * E]
    v = qkv[:, 2 * E:3 * E]

    wo_t = wo_t_ref[...]                        # (E, E) bf16

    # Per-head attention with the output projection folded into the loop:
    #   attn += (softmax(q_h k_h^T) v_h) @ wo_t[h*dh:(h+1)*dh, :]
    # This avoids the lane-dim concat of head outputs entirely.
    # (nhead is small here; for large nhead prefer lax.fori_loop(unroll=True).)
    attn = jnp.zeros((S, E), jnp.float32)
    for h in range(nhead):
        lo, hi = h * dh, (h + 1) * dh
        qh = q[:, lo:hi].astype(jnp.bfloat16)   # (S, dh)
        kh = k[:, lo:hi].astype(jnp.bfloat16)   # (S, dh)
        vh = v[:, lo:hi].astype(jnp.bfloat16)   # (S, dh)

        s = jax.lax.dot_general(                # (S, S) f32 scores
            qh, kh, (((1,), (1,)), ((), ())),
            preferred_element_type=jnp.float32)
        s = s - jnp.max(s, axis=-1, keepdims=True)
        p = jnp.exp(s)
        # EUP reciprocal instead of a VALU divide.
        p = p * pl.reciprocal(jnp.sum(p, axis=-1, keepdims=True), approx=True)

        head_out = jnp.dot(p.astype(jnp.bfloat16), vh,
                           preferred_element_type=jnp.float32)      # (S, dh)
        attn = attn + jnp.dot(head_out.astype(jnp.bfloat16), wo_t[lo:hi, :],
                              preferred_element_type=jnp.float32)   # (S, E)
    attn = attn + bo_ref[...]

    def layer_norm(z, g, b):
        mu = jnp.mean(z, axis=-1, keepdims=True)
        zc = z - mu
        var = jnp.mean(zc * zc, axis=-1, keepdims=True)
        return zc * jax.lax.rsqrt(var + eps) * g + b

    # Residual + norm1 (dropout1 is identity in eval mode).
    y1 = layer_norm(x + attn, g1_ref[...], be1_ref[...])

    # Feed-forward: linear2(relu(linear1(y1)))  (dropout is identity).
    h1 = jnp.dot(y1.astype(jnp.bfloat16), w1_t_ref[...],
                 preferred_element_type=jnp.float32) + b1_ref[...]   # (S, F)
    h1 = jnp.maximum(h1, 0.0)
    ff = jnp.dot(h1.astype(jnp.bfloat16), w2_t_ref[...],
                 preferred_element_type=jnp.float32) + b2_ref[...]   # (S, E)

    # Residual + norm2 (dropout2 is identity in eval mode).
    o_ref[0] = layer_norm(y1 + ff, g2_ref[...], be2_ref[...]).astype(o_ref.dtype)


# ----------------------------------------------------------------------------
# Wrapper
# ----------------------------------------------------------------------------
def _vmem_estimate_bytes(B, S, E, F):
    f32, bf16 = 4, 2
    weights = bf16 * (E * 3 * E + E * E + E * F + F * E) \
        + f32 * (3 * E + E + F + 5 * E)
    acts = f32 * (S * E            # x
                  + S * 3 * E      # qkv
                  + 2 * S * S      # scores + probs (one head live at a time)
                  + S * E          # attn accumulator
                  + S * F          # FFN hidden
                  + 3 * S * E)     # y1, ff, out
    io = 2 * 2 * f32 * S * E       # double-buffered x / out tiles
    return weights + acts + io


def transformer_encoder_layer(x, params, *, nhead, eps=1e-5):
    """x: (B, S, E) float32. params: dict of f32 weights (see init_params)."""
    B, S, E = x.shape
    F = params["w1"].shape[0]
    dh = E // nhead
    scale = 1.0 / math.sqrt(dh)

    # Host-side weight prep (done once):
    #  - fold the 1/sqrt(dh) query scale into the Q rows of in_proj w/b,
    #  - pre-transpose matmul weights and cast them to bf16.
    q_scale = jnp.concatenate(
        [jnp.full((E,), scale, jnp.float32), jnp.ones((2 * E,), jnp.float32)])
    in_w = params["in_proj_w"] * q_scale[:, None]          # (3E, E)
    in_b = params["in_proj_b"] * q_scale                   # (3E,)

    wqkv_t = in_w.T.astype(jnp.bfloat16)                   # (E, 3E)
    bqkv = in_b.reshape(1, 3 * E).astype(jnp.float32)
    wo_t = params["out_proj_w"].T.astype(jnp.bfloat16)     # (E, E)
    bo = params["out_proj_b"].reshape(1, E).astype(jnp.float32)
    g1 = params["norm1_w"].reshape(1, E).astype(jnp.float32)
    be1 = params["norm1_b"].reshape(1, E).astype(jnp.float32)
    w1_t = params["w1"].T.astype(jnp.bfloat16)             # (E, F)
    b1 = params["b1"].reshape(1, F).astype(jnp.float32)
    w2_t = params["w2"].T.astype(jnp.bfloat16)             # (F, E)
    b2 = params["b2"].reshape(1, E).astype(jnp.float32)
    g2 = params["norm2_w"].reshape(1, E).astype(jnp.float32)
    be2 = params["norm2_b"].reshape(1, E).astype(jnp.float32)

    # Grid-invariant weights: same block every step -> single-buffer them.
    def weight_spec(arr):
        nd = arr.ndim
        return pl.BlockSpec(arr.shape, lambda b, _nd=nd: (0,) * _nd,
                            pipeline_mode=pl.Buffered(1))

    kernel = functools.partial(_encoder_layer_kernel, nhead=nhead, eps=eps)

    # Cost estimate: matmul FLOPs, softmax transcendentals, HBM bytes.
    flops = (2 * B * S * E * 3 * E          # qkv projection
             + 2 * B * S * S * E * 2        # scores + p@v (summed over heads)
             + 2 * B * S * E * E            # output projection
             + 2 * B * S * E * F * 2)       # FFN
    transcendentals = B * nhead * S * S + B * S * (nhead + 2)
    weight_bytes = sum(int(a.size) * a.dtype.itemsize for a in
                       (wqkv_t, bqkv, wo_t, bo, g1, be1,
                        w1_t, b1, w2_t, b2, g2, be2))
    bytes_accessed = 2 * B * S * E * 4 + weight_bytes
    cost = pl.CostEstimate(flops=flops, transcendentals=transcendentals,
                           bytes_accessed=bytes_accessed)

    vmem_limit = min(100 * 1024 * 1024,
                     max(32 * 1024 * 1024, 2 * _vmem_estimate_bytes(B, S, E, F)))

    # NOTE: for real workloads E, dh and F should be multiples of 128 (lane
    # dim); the small demo shapes below are masked-store / overhead bound.
    return pl.pallas_call(
        kernel,
        out_shape=jax.ShapeDtypeStruct((B, S, E), jnp.float32),
        grid_spec=pltpu.PrefetchScalarGridSpec(
            num_scalar_prefetch=0,
            grid=(B,),
            in_specs=[
                pl.BlockSpec((1, S, E), lambda b: (b, 0, 0)),
                weight_spec(wqkv_t), weight_spec(bqkv),
                weight_spec(wo_t), weight_spec(bo),
                weight_spec(g1), weight_spec(be1),
                weight_spec(w1_t), weight_spec(b1),
                weight_spec(w2_t), weight_spec(b2),
                weight_spec(g2), weight_spec(be2),
            ],
            out_specs=pl.BlockSpec((1, S, E), lambda b: (b, 0, 0)),
        ),
        compiler_params=pltpu.CompilerParams(
            dimension_semantics=("parallel",),
            vmem_limit_bytes=int(vmem_limit)),
        cost_estimate=cost,
    )(x, wqkv_t, bqkv, wo_t, bo, g1, be1, w1_t, b1, w2_t, b2, g2, be2)


# ----------------------------------------------------------------------------
# Plain-JAX reference (f32, same math, for verification)
# ----------------------------------------------------------------------------
def reference(x, params, *, nhead, eps=1e-5):
    B, S, E = x.shape
    dh = E // nhead
    scale = 1.0 / math.sqrt(dh)

    qkv = x @ params["in_proj_w"].T + params["in_proj_b"]       # (B, S, 3E)
    q, k, v = jnp.split(qkv, 3, axis=-1)

    def heads(t):  # (B, S, E) -> (B, H, S, dh)
        return t.reshape(B, S, nhead, dh).transpose(0, 2, 1, 3)

    qh, kh, vh = heads(q) * scale, heads(k), heads(v)
    s = jnp.einsum("bhqd,bhkd->bhqk", qh, kh)
    p = jax.nn.softmax(s, axis=-1)
    attn = jnp.einsum("bhqk,bhkd->bhqd", p, vh)
    attn = attn.transpose(0, 2, 1, 3).reshape(B, S, E)
    attn = attn @ params["out_proj_w"].T + params["out_proj_b"]

    def ln(z, g, b):
        mu = jnp.mean(z, axis=-1, keepdims=True)
        var = jnp.mean((z - mu) ** 2, axis=-1, keepdims=True)
        return (z - mu) / jnp.sqrt(var + eps) * g + b

    y1 = ln(x + attn, params["norm1_w"], params["norm1_b"])
    ff = jnp.maximum(y1 @ params["w1"].T + params["b1"], 0.0)
    ff = ff @ params["w2"].T + params["b2"]
    return ln(y1 + ff, params["norm2_w"], params["norm2_b"])


def init_params(key, d_model, nhead, dim_feedforward):
    ks = jax.random.split(key, 8)
    return {
        "in_proj_w": 0.1 * jax.random.normal(ks[0], (3 * d_model, d_model), jnp.float32),
        "in_proj_b": 0.05 * jax.random.normal(ks[1], (3 * d_model,), jnp.float32),
        "out_proj_w": 0.1 * jax.random.normal(ks[2], (d_model, d_model), jnp.float32),
        "out_proj_b": 0.05 * jax.random.normal(ks[3], (d_model,), jnp.float32),
        "w1": 0.1 * jax.random.normal(ks[4], (dim_feedforward, d_model), jnp.float32),
        "b1": 0.05 * jax.random.normal(ks[5], (dim_feedforward,), jnp.float32),
        "w2": 0.1 * jax.random.normal(ks[6], (d_model, dim_feedforward), jnp.float32),
        "b2": 0.05 * jax.random.normal(ks[7], (d_model,), jnp.float32),
        "norm1_w": jnp.ones((d_model,), jnp.float32),
        "norm1_b": jnp.zeros((d_model,), jnp.float32),
        "norm2_w": jnp.ones((d_model,), jnp.float32),
        "norm2_b": jnp.zeros((d_model,), jnp.float32),
    }


if __name__ == "__main__":
    B, S, E = 2, 8, 32
    NHEAD = 4
    FF = 64

    key = jax.random.PRNGKey(0)
    k_x, k_p = jax.random.split(key)
    x = jax.random.normal(k_x, (B, S, E), jnp.float32)
    params = init_params(k_p, E, NHEAD, FF)

    out = transformer_encoder_layer(x, params, nhead=NHEAD)
    out = jax.block_until_ready(out)

    ref = reference(x, params, nhead=NHEAD)
    assert out.shape == (B, S, E)
    # bf16 MXU operands + approx reciprocal -> relaxed tolerance vs f32 ref.
    assert jnp.allclose(out, ref, atol=5e-2, rtol=5e-2), (
        "mismatch vs reference; max abs diff = "
        f"{float(jnp.max(jnp.abs(out - ref)))}")

    print("KERNEL_OK")
</pallas_src>

<mosaic_0001>
module attributes {stable_mosaic.version = 11 : i64} {
  func.func @_encoder_layer_kernel(%arg0: i32, %arg1: memref<1x8x32xf32, #tpu.memory_space<vmem>>, %arg2: memref<32x96xbf16, #tpu.memory_space<vmem>>, %arg3: memref<1x96xf32, #tpu.memory_space<vmem>>, %arg4: memref<32x32xbf16, #tpu.memory_space<vmem>>, %arg5: memref<1x32xf32, #tpu.memory_space<vmem>>, %arg6: memref<1x32xf32, #tpu.memory_space<vmem>>, %arg7: memref<1x32xf32, #tpu.memory_space<vmem>>, %arg8: memref<32x64xbf16, #tpu.memory_space<vmem>>, %arg9: memref<1x64xf32, #tpu.memory_space<vmem>>, %arg10: memref<64x32xbf16, #tpu.memory_space<vmem>>, %arg11: memref<1x32xf32, #tpu.memory_space<vmem>>, %arg12: memref<1x32xf32, #tpu.memory_space<vmem>>, %arg13: memref<1x32xf32, #tpu.memory_space<vmem>>, %arg14: memref<1x8x32xf32, #tpu.memory_space<vmem>>) attributes {dimension_semantics = [#tpu.dimension_semantics<parallel>], iteration_bounds = array<i64: 2>, scalar_prefetch = 0 : i64, scratch_operands = 0 : i64, tpu.core_type = #tpu.core_type<tc>, window_params = [{transform_indices = @transform_0, window_bounds = array<i64: 1, 8, 32>}, {pipeline_mode = #tpu.pipeline_mode<synchronous>, transform_indices = @transform_1, window_bounds = array<i64: 32, 96>}, {pipeline_mode = #tpu.pipeline_mode<synchronous>, transform_indices = @transform_2, window_bounds = array<i64: 1, 96>}, {pipeline_mode = #tpu.pipeline_mode<synchronous>, transform_indices = @transform_3, window_bounds = array<i64: 32, 32>}, {pipeline_mode = #tpu.pipeline_mode<synchronous>, transform_indices = @transform_4, window_bounds = array<i64: 1, 32>}, {pipeline_mode = #tpu.pipeline_mode<synchronous>, transform_indices = @transform_5, window_bounds = array<i64: 1, 32>}, {pipeline_mode = #tpu.pipeline_mode<synchronous>, transform_indices = @transform_6, window_bounds = array<i64: 1, 32>}, {pipeline_mode = #tpu.pipeline_mode<synchronous>, transform_indices = @transform_7, window_bounds = array<i64: 32, 64>}, {pipeline_mode = #tpu.pipeline_mode<synchronous>, transform_indices = @transform_8, window_bounds = array<i64: 1, 64>}, {pipeline_mode = #tpu.pipeline_mode<synchronous>, transform_indices = @transform_9, window_bounds = array<i64: 64, 32>}, {pipeline_mode = #tpu.pipeline_mode<synchronous>, transform_indices = @transform_10, window_bounds = array<i64: 1, 32>}, {pipeline_mode = #tpu.pipeline_mode<synchronous>, transform_indices = @transform_11, window_bounds = array<i64: 1, 32>}, {pipeline_mode = #tpu.pipeline_mode<synchronous>, transform_indices = @transform_12, window_bounds = array<i64: 1, 32>}, {transform_indices = @transform_13, window_bounds = array<i64: 1, 8, 32>}]} {
    %c0 = arith.constant 0 : index
    %c0_0 = arith.constant 0 : index
    %c0_1 = arith.constant 0 : index
    %0 = vector.load %arg1[%c0, %c0_0, %c0_1] : memref<1x8x32xf32, #tpu.memory_space<vmem>>, vector<1x8x32xf32>
    %1 = vector.shape_cast %0 : vector<1x8x32xf32> to vector<8x32xf32>
    %2 = arith.truncf %1 : vector<8x32xf32> to vector<8x32xbf16>
    %c0_2 = arith.constant 0 : index
    %c0_3 = arith.constant 0 : index
    %3 = vector.load %arg2[%c0_2, %c0_3] : memref<32x96xbf16, #tpu.memory_space<vmem>>, vector<32x96xbf16>
    %cst = arith.constant dense<0.000000e+00> : vector<8x96xf32>
    %4 = tpu.matmul %2, %3, %cst {dimension_numbers = #tpu.dot_dimension_numbers<[1], [0], [0], [1], [0, 0, 1, 1], [], []>} : vector<8x32xbf16>, vector<32x96xbf16>, vector<8x96xf32> -> vector<8x96xf32>
    %c0_4 = arith.constant 0 : index
    %c0_5 = arith.constant 0 : index
    %5 = vector.load %arg3[%c0_4, %c0_5] : memref<1x96xf32, #tpu.memory_space<vmem>>, vector<1x96xf32>
    %6 = vector.broadcast %5 : vector<1x96xf32> to vector<8x96xf32>
    %7 = arith.addf %4, %6 : vector<8x96xf32>
    %8 = vector.extract_strided_slice %7 {offsets = [0, 0], sizes = [8, 32], strides = [1, 1]} : vector<8x96xf32> to vector<8x32xf32>
    %9 = vector.extract_strided_slice %7 {offsets = [0, 32], sizes = [8, 32], strides = [1, 1]} : vector<8x96xf32> to vector<8x32xf32>
    %10 = vector.extract_strided_slice %7 {offsets = [0, 64], sizes = [8, 32], strides = [1, 1]} : vector<8x96xf32> to vector<8x32xf32>
    %c0_6 = arith.constant 0 : index
    %c0_7 = arith.constant 0 : index
    %11 = vector.load %arg4[%c0_6, %c0_7] : memref<32x32xbf16, #tpu.memory_space<vmem>>, vector<32x32xbf16>
    %cst_8 = arith.constant 0.000000e+00 : f32
    %12 = vector.broadcast %cst_8 : f32 to vector<8x32xf32>
    %13 = vector.extract_strided_slice %8 {offsets = [0, 0], sizes = [8, 8], strides = [1, 1]} : vector<8x32xf32> to vector<8x8xf32>
    %14 = arith.truncf %13 : vector<8x8xf32> to vector<8x8xbf16>
    %15 = vector.extract_strided_slice %9 {offsets = [0, 0], sizes = [8, 8], strides = [1, 1]} : vector<8x32xf32> to vector<8x8xf32>
    %16 = arith.truncf %15 : vector<8x8xf32> to vector<8x8xbf16>
    %17 = vector.extract_strided_slice %10 {offsets = [0, 0], sizes = [8, 8], strides = [1, 1]} : vector<8x32xf32> to vector<8x8xf32>
    %18 = arith.truncf %17 : vector<8x8xf32> to vector<8x8xbf16>
    %cst_9 = arith.constant dense<0.000000e+00> : vector<8x8xf32>
    %19 = tpu.matmul %14, %16, %cst_9 {dimension_numbers = #tpu.dot_dimension_numbers<[1], [1], [0], [0], [0, 0, 1, 0], [], []>} : vector<8x8xbf16>, vector<8x8xbf16>, vector<8x8xf32> -> vector<8x8xf32>
    %cst_10 = arith.constant dense<0xFF800000> : vector<8xf32>
    %20 = vector.multi_reduction <maximumf>, %19, %cst_10 [1] : vector<8x8xf32> to vector<8xf32>
    %21 = vector.shape_cast %20 : vector<8xf32> to vector<8x1xf32>
    %22 = vector.broadcast %21 : vector<8x1xf32> to vector<8x8xf32>
    %23 = arith.subf %19, %22 : vector<8x8xf32>
    %24 = math.exp %23 : vector<8x8xf32>
    %cst_11 = arith.constant dense<0.000000e+00> : vector<8xf32>
    %25 = vector.multi_reduction <add>, %24, %cst_11 [1] : vector<8x8xf32> to vector<8xf32>
    %26 = vector.shape_cast %25 : vector<8xf32> to vector<8x1xf32>
    %27 = tpu.reciprocal %26 {approx = true} : vector<8x1xf32> -> vector<8x1xf32>
    %28 = vector.broadcast %27 : vector<8x1xf32> to vector<8x8xf32>
    %29 = arith.mulf %24, %28 : vector<8x8xf32>
    %30 = arith.truncf %29 : vector<8x8xf32> to vector<8x8xbf16>
    %cst_12 = arith.constant dense<0.000000e+00> : vector<8x8xf32>
    %31 = tpu.matmul %30, %18, %cst_12 {dimension_numbers = #tpu.dot_dimension_numbers<[1], [0], [0], [1], [0, 0, 1, 1], [], []>} : vector<8x8xbf16>, vector<8x8xbf16>, vector<8x8xf32> -> vector<8x8xf32>
    %32 = arith.truncf %31 : vector<8x8xf32> to vector<8x8xbf16>
    %33 = vector.extract_strided_slice %11 {offsets = [0, 0], sizes = [8, 32], strides = [1, 1]} : vector<32x32xbf16> to vector<8x32xbf16>
    %cst_13 = arith.constant dense<0.000000e+00> : vector<8x32xf32>
    %34 = tpu.matmul %32, %33, %cst_13 {dimension_numbers = #tpu.dot_dimension_numbers<[1], [0], [0], [1], [0, 0, 1, 1], [], []>} : vector<8x8xbf16>, vector<8x32xbf16>, vector<8x32xf32> -> vector<8x32xf32>
    %35 = arith.addf %12, %34 : vector<8x32xf32>
    %36 = vector.extract_strided_slice %8 {offsets = [0, 8], sizes = [8, 8], strides = [1, 1]} : vector<8x32xf32> to vector<8x8xf32>
    %37 = arith.truncf %36 : vector<8x8xf32> to vector<8x8xbf16>
    %38 = vector.extract_strided_slice %9 {offsets = [0, 8], sizes = [8, 8], strides = [1, 1]} : vector<8x32xf32> to vector<8x8xf32>
    %39 = arith.truncf %38 : vector<8x8xf32> to vector<8x8xbf16>
    %40 = vector.extract_strided_slice %10 {offsets = [0, 8], sizes = [8, 8], strides = [1, 1]} : vector<8x32xf32> to vector<8x8xf32>
    %41 = arith.truncf %40 : vector<8x8xf32> to vector<8x8xbf16>
    %cst_14 = arith.constant dense<0.000000e+00> : vector<8x8xf32>
    %42 = tpu.matmul %37, %39, %cst_14 {dimension_numbers = #tpu.dot_dimension_numbers<[1], [1], [0], [0], [0, 0, 1, 0], [], []>} : vector<8x8xbf16>, vector<8x8xbf16>, vector<8x8xf32> -> vector<8x8xf32>
    %cst_15 = arith.constant dense<0xFF800000> : vector<8xf32>
    %43 = vector.multi_reduction <maximumf>, %42, %cst_15 [1] : vector<8x8xf32> to vector<8xf32>
    %44 = vector.shape_cast %43 : vector<8xf32> to vector<8x1xf32>
    %45 = vector.broadcast %44 : vector<8x1xf32> to vector<8x8xf32>
    %46 = arith.subf %42, %45 : vector<8x8xf32>
    %47 = math.exp %46 : vector<8x8xf32>
    %cst_16 = arith.constant dense<0.000000e+00> : vector<8xf32>
    %48 = vector.multi_reduction <add>, %47, %cst_16 [1] : vector<8x8xf32> to vector<8xf32>
    %49 = vector.shape_cast %48 : vector<8xf32> to vector<8x1xf32>
    %50 = tpu.reciprocal %49 {approx = true} : vector<8x1xf32> -> vector<8x1xf32>
    %51 = vector.broadcast %50 : vector<8x1xf32> to vector<8x8xf32>
    %52 = arith.mulf %47, %51 : vector<8x8xf32>
    %53 = arith.truncf %52 : vector<8x8xf32> to vector<8x8xbf16>
    %cst_17 = arith.constant dense<0.000000e+00> : vector<8x8xf32>
    %54 = tpu.matmul %53, %41, %cst_17 {dimension_numbers = #tpu.dot_dimension_numbers<[1], [0], [0], [1], [0, 0, 1, 1], [], []>} : vector<8x8xbf16>, vector<8x8xbf16>, vector<8x8xf32> -> vector<8x8xf32>
    %55 = arith.truncf %54 : vector<8x8xf32> to vector<8x8xbf16>
    %56 = vector.extract_strided_slice %11 {offsets = [8, 0], sizes = [8, 32], strides = [1, 1]} : vector<32x32xbf16> to vector<8x32xbf16>
    %cst_18 = arith.constant dense<0.000000e+00> : vector<8x32xf32>
    %57 = tpu.matmul %55, %56, %cst_18 {dimension_numbers = #tpu.dot_dimension_numbers<[1], [0], [0], [1], [0, 0, 1, 1], [], []>} : vector<8x8xbf16>, vector<8x32xbf16>, vector<8x32xf32> -> vector<8x32xf32>
    %58 = arith.addf %35, %57 : vector<8x32xf32>
    %59 = vector.extract_strided_slice %8 {offsets = [0, 16], sizes = [8, 8], strides = [1, 1]} : vector<8x32xf32> to vector<8x8xf32>
    %60 = arith.truncf %59 : vector<8x8xf32> to vector<8x8xbf16>
    %61 = vector.extract_strided_slice %9 {offsets = [0, 16], sizes = [8, 8], strides = [1, 1]} : vector<8x32xf32> to vector<8x8xf32>
    %62 = arith.truncf %61 : vector<8x8xf32> to vector<8x8xbf16>
    %63 = vector.extract_strided_slice %10 {offsets = [0, 16], sizes = [8, 8], strides = [1, 1]} : vector<8x32xf32> to vector<8x8xf32>
    %64 = arith.truncf %63 : vector<8x8xf32> to vector<8x8xbf16>
    %cst_19 = arith.constant dense<0.000000e+00> : vector<8x8xf32>
    %65 = tpu.matmul %60, %62, %cst_19 {dimension_numbers = #tpu.dot_dimension_numbers<[1], [1], [0], [0], [0, 0, 1, 0], [], []>} : vector<8x8xbf16>, vector<8x8xbf16>, vector<8x8xf32> -> vector<8x8xf32>
    %cst_20 = arith.constant dense<0xFF800000> : vector<8xf32>
    %66 = vector.multi_reduction <maximumf>, %65, %cst_20 [1] : vector<8x8xf32> to vector<8xf32>
    %67 = vector.shape_cast %66 : vector<8xf32> to vector<8x1xf32>
    %68 = vector.broadcast %67 : vector<8x1xf32> to vector<8x8xf32>
    %69 = arith.subf %65, %68 : vector<8x8xf32>
    %70 = math.exp %69 : vector<8x8xf32>
    %cst_21 = arith.constant dense<0.000000e+00> : vector<8xf32>
    %71 = vector.multi_reduction <add>, %70, %cst_21 [1] : vector<8x8xf32> to vector<8xf32>
    %72 = vector.shape_cast %71 : vector<8xf32> to vector<8x1xf32>
    %73 = tpu.reciprocal %72 {approx = true} : vector<8x1xf32> -> vector<8x1xf32>
    %74 = vector.broadcast %73 : vector<8x1xf32> to vector<8x8xf32>
    %75 = arith.mulf %70, %74 : vector<8x8xf32>
    %76 = arith.truncf %75 : vector<8x8xf32> to vector<8x8xbf16>
    %cst_22 = arith.constant dense<0.000000e+00> : vector<8x8xf32>
    %77 = tpu.matmul %76, %64, %cst_22 {dimension_numbers = #tpu.dot_dimension_numbers<[1], [0], [0], [1], [0, 0, 1, 1], [], []>} : vector<8x8xbf16>, vector<8x8xbf16>, vector<8x8xf32> -> vector<8x8xf32>
    %78 = arith.truncf %77 : vector<8x8xf32> to vector<8x8xbf16>
    %79 = vector.extract_strided_slice %11 {offsets = [16, 0], sizes = [8, 32], strides = [1, 1]} : vector<32x32xbf16> to vector<8x32xbf16>
    %cst_23 = arith.constant dense<0.000000e+00> : vector<8x32xf32>
    %80 = tpu.matmul %78, %79, %cst_23 {dimension_numbers = #tpu.dot_dimension_numbers<[1], [0], [0], [1], [0, 0, 1, 1], [], []>} : vector<8x8xbf16>, vector<8x32xbf16>, vector<8x32xf32> -> vector<8x32xf32>
    %81 = arith.addf %58, %80 : vector<8x32xf32>
    %82 = vector.extract_strided_slice %8 {offsets = [0, 24], sizes = [8, 8], strides = [1, 1]} : vector<8x32xf32> to vector<8x8xf32>
    %83 = arith.truncf %82 : vector<8x8xf32> to vector<8x8xbf16>
    %84 = vector.extract_strided_slice %9 {offsets = [0, 24], sizes = [8, 8], strides = [1, 1]} : vector<8x32xf32> to vector<8x8xf32>
    %85 = arith.truncf %84 : vector<8x8xf32> to vector<8x8xbf16>
    %86 = vector.extract_strided_slice %10 {offsets = [0, 24], sizes = [8, 8], strides = [1, 1]} : vector<8x32xf32> to vector<8x8xf32>
    %87 = arith.truncf %86 : vector<8x8xf32> to vector<8x8xbf16>
    %cst_24 = arith.constant dense<0.000000e+00> : vector<8x8xf32>
    %88 = tpu.matmul %83, %85, %cst_24 {dimension_numbers = #tpu.dot_dimension_numbers<[1], [1], [0], [0], [0, 0, 1, 0], [], []>} : vector<8x8xbf16>, vector<8x8xbf16>, vector<8x8xf32> -> vector<8x8xf32>
    %cst_25 = arith.constant dense<0xFF800000> : vector<8xf32>
    %89 = vector.multi_reduction <maximumf>, %88, %cst_25 [1] : vector<8x8xf32> to vector<8xf32>
    %90 = vector.shape_cast %89 : vector<8xf32> to vector<8x1xf32>
    %91 = vector.broadcast %90 : vector<8x1xf32> to vector<8x8xf32>
    %92 = arith.subf %88, %91 : vector<8x8xf32>
    %93 = math.exp %92 : vector<8x8xf32>
    %cst_26 = arith.constant dense<0.000000e+00> : vector<8xf32>
    %94 = vector.multi_reduction <add>, %93, %cst_26 [1] : vector<8x8xf32> to vector<8xf32>
    %95 = vector.shape_cast %94 : vector<8xf32> to vector<8x1xf32>
    %96 = tpu.reciprocal %95 {approx = true} : vector<8x1xf32> -> vector<8x1xf32>
    %97 = vector.broadcast %96 : vector<8x1xf32> to vector<8x8xf32>
    %98 = arith.mulf %93, %97 : vector<8x8xf32>
    %99 = arith.truncf %98 : vector<8x8xf32> to vector<8x8xbf16>
    %cst_27 = arith.constant dense<0.000000e+00> : vector<8x8xf32>
    %100 = tpu.matmul %99, %87, %cst_27 {dimension_numbers = #tpu.dot_dimension_numbers<[1], [0], [0], [1], [0, 0, 1, 1], [], []>} : vector<8x8xbf16>, vector<8x8xbf16>, vector<8x8xf32> -> vector<8x8xf32>
    %101 = arith.truncf %100 : vector<8x8xf32> to vector<8x8xbf16>
    %102 = vector.extract_strided_slice %11 {offsets = [24, 0], sizes = [8, 32], strides = [1, 1]} : vector<32x32xbf16> to vector<8x32xbf16>
    %cst_28 = arith.constant dense<0.000000e+00> : vector<8x32xf32>
    %103 = tpu.matmul %101, %102, %cst_28 {dimension_numbers = #tpu.dot_dimension_numbers<[1], [0], [0], [1], [0, 0, 1, 1], [], []>} : vector<8x8xbf16>, vector<8x32xbf16>, vector<8x32xf32> -> vector<8x32xf32>
    %104 = arith.addf %81, %103 : vector<8x32xf32>
    %c0_29 = arith.constant 0 : index
    %c0_30 = arith.constant 0 : index
    %105 = vector.load %arg5[%c0_29, %c0_30] : memref<1x32xf32, #tpu.memory_space<vmem>>, vector<1x32xf32>
    %106 = vector.broadcast %105 : vector<1x32xf32> to vector<8x32xf32>
    %107 = arith.addf %104, %106 : vector<8x32xf32>
    %108 = arith.addf %1, %107 : vector<8x32xf32>
    %c0_31 = arith.constant 0 : index
    %c0_32 = arith.constant 0 : index
    %109 = vector.load %arg6[%c0_31, %c0_32] : memref<1x32xf32, #tpu.memory_space<vmem>>, vector<1x32xf32>
    %c0_33 = arith.constant 0 : index
    %c0_34 = arith.constant 0 : index
    %110 = vector.load %arg7[%c0_33, %c0_34] : memref<1x32xf32, #tpu.memory_space<vmem>>, vector<1x32xf32>
    %cst_35 = arith.constant dense<0.000000e+00> : vector<8xf32>
    %111 = vector.multi_reduction <add>, %108, %cst_35 [1] : vector<8x32xf32> to vector<8xf32>
    %112 = vector.shape_cast %111 : vector<8xf32> to vector<8x1xf32>
    %cst_36 = arith.constant 3.200000e+01 : f32
    %113 = vector.broadcast %cst_36 : f32 to vector<8x1xf32>
    %114 = arith.divf %112, %113 : vector<8x1xf32>
    %115 = vector.broadcast %114 : vector<8x1xf32> to vector<8x32xf32>
    %116 = arith.subf %108, %115 : vector<8x32xf32>
    %117 = arith.mulf %116, %116 : vector<8x32xf32>
    %cst_37 = arith.constant dense<0.000000e+00> : vector<8xf32>
    %118 = vector.multi_reduction <add>, %117, %cst_37 [1] : vector<8x32xf32> to vector<8xf32>
    %119 = vector.shape_cast %118 : vector<8xf32> to vector<8x1xf32>
    %cst_38 = arith.constant 3.200000e+01 : f32
    %120 = vector.broadcast %cst_38 : f32 to vector<8x1xf32>
    %121 = arith.divf %119, %120 : vector<8x1xf32>
    %cst_39 = arith.constant 9.99999974E-6 : f32
    %122 = vector.broadcast %cst_39 : f32 to vector<8x1xf32>
    %123 = arith.addf %121, %122 : vector<8x1xf32>
    %124 = math.rsqrt %123 : vector<8x1xf32>
    %125 = vector.broadcast %124 : vector<8x1xf32> to vector<8x32xf32>
    %126 = arith.mulf %116, %125 : vector<8x32xf32>
    %127 = vector.broadcast %109 : vector<1x32xf32> to vector<8x32xf32>
    %128 = arith.mulf %126, %127 : vector<8x32xf32>
    %129 = vector.broadcast %110 : vector<1x32xf32> to vector<8x32xf32>
    %130 = arith.addf %128, %129 : vector<8x32xf32>
    %131 = arith.truncf %130 : vector<8x32xf32> to vector<8x32xbf16>
    %c0_40 = arith.constant 0 : index
    %c0_41 = arith.constant 0 : index
    %132 = vector.load %arg8[%c0_40, %c0_41] : memref<32x64xbf16, #tpu.memory_space<vmem>>, vector<32x64xbf16>
    %cst_42 = arith.constant dense<0.000000e+00> : vector<8x64xf32>
    %133 = tpu.matmul %131, %132, %cst_42 {dimension_numbers = #tpu.dot_dimension_numbers<[1], [0], [0], [1], [0, 0, 1, 1], [], []>} : vector<8x32xbf16>, vector<32x64xbf16>, vector<8x64xf32> -> vector<8x64xf32>
    %c0_43 = arith.constant 0 : index
    %c0_44 = arith.constant 0 : index
    %134 = vector.load %arg9[%c0_43, %c0_44] : memref<1x64xf32, #tpu.memory_space<vmem>>, vector<1x64xf32>
    %135 = vector.broadcast %134 : vector<1x64xf32> to vector<8x64xf32>
    %136 = arith.addf %133, %135 : vector<8x64xf32>
    %cst_45 = arith.constant 0.000000e+00 : f32
    %137 = vector.broadcast %cst_45 : f32 to vector<8x64xf32>
    %138 = arith.maximumf %136, %137 : vector<8x64xf32>
    %139 = arith.truncf %138 : vector<8x64xf32> to vector<8x64xbf16>
    %c0_46 = arith.constant 0 : index
    %c0_47 = arith.constant 0 : index
    %140 = vector.load %arg10[%c0_46, %c0_47] : memref<64x32xbf16, #tpu.memory_space<vmem>>, vector<64x32xbf16>
    %cst_48 = arith.constant dense<0.000000e+00> : vector<8x32xf32>
    %141 = tpu.matmul %139, %140, %cst_48 {dimension_numbers = #tpu.dot_dimension_numbers<[1], [0], [0], [1], [0, 0, 1, 1], [], []>} : vector<8x64xbf16>, vector<64x32xbf16>, vector<8x32xf32> -> vector<8x32xf32>
    %c0_49 = arith.constant 0 : index
    %c0_50 = arith.constant 0 : index
    %142 = vector.load %arg11[%c0_49, %c0_50] : memref<1x32xf32, #tpu.memory_space<vmem>>, vector<1x32xf32>
    %143 = vector.broadcast %142 : vector<1x32xf32> to vector<8x32xf32>
    %144 = arith.addf %141, %143 : vector<8x32xf32>
    %145 = arith.addf %130, %144 : vector<8x32xf32>
    %c0_51 = arith.constant 0 : index
    %c0_52 = arith.constant 0 : index
    %146 = vector.load %arg12[%c0_51, %c0_52] : memref<1x32xf32, #tpu.memory_space<vmem>>, vector<1x32xf32>
    %c0_53 = arith.constant 0 : index
    %c0_54 = arith.constant 0 : index
    %147 = vector.load %arg13[%c0_53, %c0_54] : memref<1x32xf32, #tpu.memory_space<vmem>>, vector<1x32xf32>
    %cst_55 = arith.constant dense<0.000000e+00> : vector<8xf32>
    %148 = vector.multi_reduction <add>, %145, %cst_55 [1] : vector<8x32xf32> to vector<8xf32>
    %149 = vector.shape_cast %148 : vector<8xf32> to vector<8x1xf32>
    %cst_56 = arith.constant 3.200000e+01 : f32
    %150 = vector.broadcast %cst_56 : f32 to vector<8x1xf32>
    %151 = arith.divf %149, %150 : vector<8x1xf32>
    %152 = vector.broadcast %151 : vector<8x1xf32> to vector<8x32xf32>
    %153 = arith.subf %145, %152 : vector<8x32xf32>
    %154 = arith.mulf %153, %153 : vector<8x32xf32>
    %cst_57 = arith.constant dense<0.000000e+00> : vector<8xf32>
    %155 = vector.multi_reduction <add>, %154, %cst_57 [1] : vector<8x32xf32> to vector<8xf32>
    %156 = vector.shape_cast %155 : vector<8xf32> to vector<8x1xf32>
    %cst_58 = arith.constant 3.200000e+01 : f32
    %157 = vector.broadcast %cst_58 : f32 to vector<8x1xf32>
    %158 = arith.divf %156, %157 : vector<8x1xf32>
    %cst_59 = arith.constant 9.99999974E-6 : f32
    %159 = vector.broadcast %cst_59 : f32 to vector<8x1xf32>
    %160 = arith.addf %158, %159 : vector<8x1xf32>
    %161 = math.rsqrt %160 : vector<8x1xf32>
    %162 = vector.broadcast %161 : vector<8x1xf32> to vector<8x32xf32>
    %163 = arith.mulf %153, %162 : vector<8x32xf32>
    %164 = vector.broadcast %146 : vector<1x32xf32> to vector<8x32xf32>
    %165 = arith.mulf %163, %164 : vector<8x32xf32>
    %166 = vector.broadcast %147 : vector<1x32xf32> to vector<8x32xf32>
    %167 = arith.addf %165, %166 : vector<8x32xf32>
    %c0_60 = arith.constant 0 : index
    %c0_61 = arith.constant 0 : index
    %c0_62 = arith.constant 0 : index
    %168 = vector.load %arg14[%c0_60, %c0_61, %c0_62] : memref<1x8x32xf32, #tpu.memory_space<vmem>>, vector<1x8x32xf32>
    %169 = vector.shape_cast %168 : vector<1x8x32xf32> to vector<8x32xf32>
    %170 = vector.shape_cast %167 : vector<8x32xf32> to vector<1x8x32xf32>
    tpu.vector_store %arg14[%c0_60, %c0_61, %c0_62], %170 {strides = array<i32>} : memref<1x8x32xf32, #tpu.memory_space<vmem>>, vector<1x8x32xf32>,
    return
  }
  func.func @transform_0(%arg0: i32) -> (i32, i32, i32) {
    %c0_i32 = arith.constant 0 : i32
    %c0_i32_0 = arith.constant 0 : i32
    %c0_i32_1 = arith.constant 0 : i32
    return %arg0, %c0_i32, %c0_i32_0 : i32, i32, i32
  }
  func.func @transform_1(%arg0: i32) -> (i32, i32) {
    %c0_i32 = arith.constant 0 : i32
    %c0_i32_0 = arith.constant 0 : i32
    %c0_i32_1 = arith.constant 0 : i32
    return %c0_i32, %c0_i32_0 : i32, i32
  }
  func.func @transform_2(%arg0: i32) -> (i32, i32) {
    %c0_i32 = arith.constant 0 : i32
    %c0_i32_0 = arith.constant 0 : i32
    %c0_i32_1 = arith.constant 0 : i32
    return %c0_i32, %c0_i32_0 : i32, i32
  }
  func.func @transform_3(%arg0: i32) -> (i32, i32) {
    %c0_i32 = arith.constant 0 : i32
    %c0_i32_0 = arith.constant 0 : i32
    %c0_i32_1 = arith.constant 0 : i32
    return %c0_i32, %c0_i32_0 : i32, i32
  }
  func.func @transform_4(%arg0: i32) -> (i32, i32) {
    %c0_i32 = arith.constant 0 : i32
    %c0_i32_0 = arith.constant 0 : i32
    %c0_i32_1 = arith.constant 0 : i32
    return %c0_i32, %c0_i32_0 : i32, i32
  }
  func.func @transform_5(%arg0: i32) -> (i32, i32) {
    %c0_i32 = arith.constant 0 : i32
    %c0_i32_0 = arith.constant 0 : i32
    %c0_i32_1 = arith.constant 0 : i32
    return %c0_i32, %c0_i32_0 : i32, i32
  }
  func.func @transform_6(%arg0: i32) -> (i32, i32) {
    %c0_i32 = arith.constant 0 : i32
    %c0_i32_0 = arith.constant 0 : i32
    %c0_i32_1 = arith.constant 0 : i32
    return %c0_i32, %c0_i32_0 : i32, i32
  }
  func.func @transform_7(%arg0: i32) -> (i32, i32) {
    %c0_i32 = arith.constant 0 : i32
    %c0_i32_0 = arith.constant 0 : i32
    %c0_i32_1 = arith.constant 0 : i32
    return %c0_i32, %c0_i32_0 : i32, i32
  }
  func.func @transform_8(%arg0: i32) -> (i32, i32) {
    %c0_i32 = arith.constant 0 : i32
    %c0_i32_0 = arith.constant 0 : i32
    %c0_i32_1 = arith.constant 0 : i32
    return %c0_i32, %c0_i32_0 : i32, i32
  }
  func.func @transform_9(%arg0: i32) -> (i32, i32) {
    %c0_i32 = arith.constant 0 : i32
    %c0_i32_0 = arith.constant 0 : i32
    %c0_i32_1 = arith.constant 0 : i32
    return %c0_i32, %c0_i32_0 : i32, i32
  }
  func.func @transform_10(%arg0: i32) -> (i32, i32) {
    %c0_i32 = arith.constant 0 : i32
    %c0_i32_0 = arith.constant 0 : i32
    %c0_i32_1 = arith.constant 0 : i32
    return %c0_i32, %c0_i32_0 : i32, i32
  }
  func.func @transform_11(%arg0: i32) -> (i32, i32) {
    %c0_i32 = arith.constant 0 : i32
    %c0_i32_0 = arith.constant 0 : i32
    %c0_i32_1 = arith.constant 0 : i32
    return %c0_i32, %c0_i32_0 : i32, i32
  }
  func.func @transform_12(%arg0: i32) -> (i32, i32) {
    %c0_i32 = arith.constant 0 : i32
    %c0_i32_0 = arith.constant 0 : i32
    %c0_i32_1 = arith.constant 0 : i32
    return %c0_i32, %c0_i32_0 : i32, i32
  }
  func.func @transform_13(%arg0: i32) -> (i32, i32, i32) {
    %c0_i32 = arith.constant 0 : i32
    %c0_i32_0 = arith.constant 0 : i32
    %c0_i32_1 = arith.constant 0 : i32
    return %arg0, %c0_i32, %c0_i32_0 : i32, i32, i32
  }
}

</mosaic_0001>

<bundles_post_ra>
// kernel: tpu_custom_call.1
= control target key start
LH: loop header
LB: loop body
LE: loop exit
PB: predicated region body
PF: predicated region fallthrough
CT: control target
= control target key end

     0   :  { %s1618_s0 = inlined_call_operand.vmem [shape: f32[2,8,32], index: 0, kind: input, shape index: {}]   ;;  %s1619_s1 = inlined_call_operand.vmem [shape: bf16[32,96], index: 1, kind: input, shape index: {}]   ;;  %s1620_s2 = inlined_call_operand.vmem [shape: f32[1,96], index: 2, kind: input, shape index: {}]   ;;  %s1621_s3 = inlined_call_operand.vmem [shape: bf16[32,32], index: 3, kind: input, shape index: {}]   ;;  %s1622_s4 = inlined_call_operand.vmem [shape: f32[1,32], index: 4, kind: input, shape index: {}]   ;;  %s1623_s5 = inlined_call_operand.vmem [shape: f32[1,32], index: 5, kind: input, shape index: {}]   ;;  %s1624_s6 = inlined_call_operand.vmem [shape: f32[1,32], index: 6, kind: input, shape index: {}]   ;;  %s1625_s7 = inlined_call_operand.hbm [shape: bf16[32,64], index: 7, kind: input, shape index: {}]   ;;  %s1626_s8 = inlined_call_operand.vmem [shape: f32[1,64], index: 8, kind: input, shape index: {}]   ;;  %s1627_s9 = inlined_call_operand.vmem [shape: bf16[64,32], index: 9, kind: input, shape index: {}]   ;;  %s1628_s10 = inlined_call_operand.vmem [shape: f32[1,32], index: 10, kind: input, shape index: {}]   ;;  %s1629_s11 = inlined_call_operand.vmem [shape: f32[1,32], index: 11, kind: input, shape index: {}]   ;;  %s1630_s12 = inlined_call_operand.vmem [shape: f32[1,32], index: 12, kind: input, shape index: {}]   ;;  %s1631_s13 = inlined_call_operand.hbm [shape: f32[2,8,32], index: 13, kind: output, shape index: {}]  }
   0x1   :  { %1633 = sst [smem:[#allocation10_spill]] %s1618_s0 }
   0x2   :  { %1634 = sst [smem:[#allocation11_spill]] %s1625_s7 }
   0x3   :  { %18 = vsyncpa [#allocation3], 0 }
   0x4   :  { %19 = vsyncpa [#allocation4], 0 }
   0x5   :  { %21 = vsyncpa [#allocation4 + $0x1], 0  ;;  %s1407_s25 = smov 0   ;;  %s1409_s26 = smov 0  }
   0x6   :  { %s1411_s27 = smov 0   ;;  %s1413_s28 = smov 0  }
   0x7 LB: > { %1635 = sst [smem:[#allocation8_spill]] %s1316_s27  ;;  %s1428_s29 = sadd.s32 4294967295, %s1320_s28   ;;  %s1320_s28 = sphi %s1413_s28, %s1645_s28   ;;  %s1316_s27 = sphi %s1411_s27, %s1642_s27   ;;  %s1312_s26 = sphi %s1409_s26, %s1644_s26   ;;  %s1308_s25 = sphi %s1407_s25, %s1643_s25  }
   0x8   : > { %s1063_s30 = sadd.s32 4294967294, %s1320_s28   ;;  %s1432_s14 = sadd.s32 1, %s1320_s28  }
   0x9   : > { %s312_s15 = sadd.s32 1, %s1316_s27  ;;  %s309_s16 = ssub.s32 %s1320_s28, %s1432_s14 }
   0xa   : > { %p322_p0 = scmp.ne.s32.totalorder %s1316_s27, %s1312_s26  ;;  %p310_p1 = scmp.eq.s32.totalorder %s309_s16, 0 }
   0xb   : > { %p323_p2 = scmp.eq.s32.totalorder %s1428_s29, 1  ;;  %p328_p3 = scmp.ne.s32.totalorder %s1312_s26, %s1308_s25 }
   0xc   : > { %p329_p4 = scmp.eq.s32.totalorder %s1063_s30, 1  ;;  %p1064_p7 = scmp.ge.s32.totalorder %s1320_s28, 1 }
   0xd   : > { %s1443_s17 = scalar_select %p310_p1, %s1316_s27, %s312_s15  }
   0xe   : > { %p1445_p5 = por %p323_p2, %p322_p0  ;;  %p1449_p6 = por %p329_p4, %p328_p3 }
   0xf   : > { %1636 = sst [smem:[#allocation9_spill]] %s1443_s17  ;;  %p336_p8 = scmp.lt.s32.totalorder %s1320_s28, 3 }
  0x10   : > { %p1144_p9 = scmp.eq.s32.totalorder %s1428_s29, 0  ;;  %s1639_s7 = sld [smem:[#allocation11_spill]] }
  0x11   : > { %p337_p10 = pnand %p1064_p7, %p336_p8  ;;  %s1322_s23 = smov [#allocation2]  }
  0x12   : > { %s367_s24 = sshll.u32 %s1322_s23, 4  ;;  %s1323_s30 = smov 64   ;;  %s368_s24 = int_to_ptr.vmem [resolvable:$true] %s367_s24 }
  0x13   : > { %p1136_p11 = pneg %p337_p10  ;;  %s1324_s15 = smov 4  }
  0x14   : > { %405 = sbr.rel (%p337_p10) target bundleno = 2295 (0x8f7), region = 72 }
  0x15   : > { %p1137_p12 = pnand %p1144_p9, %p1136_p11 }
  0x16   : > { %s365_s22 = sshll.u32 %s1639_s7, 4  ;;  %s366_s22 = int_to_ptr.hbm [resolvable:$true] %s365_s22 }
  0x17   : > { %1139 = dma.hbm_to_vmem [thread:$0]  (!%p1137_p12), %s366_s22, 256, %s368_s24, [#allocation3], %s1323_s30, %s1323_s30, %s1324_s15  }
  0x19   : > { %1299 = dma.done.wait (%p1144_p9), [#allocation3], 256  }
  0x1a   : > { %1301 = vsyncadd (%p1144_p9), [#allocation3], 4294967040  ;;  %p449_p13 = scmp.lt.s32.totalorder %s1428_s29, 1  ;;  %s1640_s0 = sld [smem:[#allocation10_spill]]  ;;  %v1123_v0 = vld [vmem:[%s1619_s1 + $0x8] sm:$0xff]  ;;  %v1122_v1 = vld [vmem:[%s1619_s1] sm:$0xff] }
  0x1b   : > { %486 = vmatpush.bf16.msra.mxu0 %v1123_v0  ;;  %vm476_vm0 = vcmask 261120   ;;  %v1194_v4 = vld [vmem:[%s1620_s2] ss:$0 sm:$0xff]  ;;  %s1325_s27 = smov 88   ;;  %s1327_s17 = smov 120   ;;  %vm501_vm1 = vcmask 64512  }
  0x1c   : > { %s450_s16 = scalar_select %p449_p13, %s1428_s29, 1  ;;  %v493_v14 = vld [vmem:[%s1621_s3] sm:$0xf]  ;;  %vm538_vm2 = vcmask 1043456   ;;  %v494_v55 = vld [vmem:[%s1621_s3 + $0x4] sm:$0xf] }
  0x1d   : > { %s1330_s21 = smov 112   ;;  %v636_v17 = vsel %vm538_vm2, %v493_v14, 0  ;;  %s1331_s24 = smov 56   ;;  %v617_v56 = vsel %vm538_vm2, %v494_v55, 0  ;;  %vm925_vm7 = vcmask 523264  }
  0x1e   : > { %s1070_s20 = sshll.u32 %s450_s16, 3  ;;  %s1328_s16 = smov 80  }
  0x1f   : > { %487 = vmatpush.bf16.msra.mxu0 %v1122_v1  ;;  %s1332_s30 = smov 40   ;;  %s1333_s15 = smov 64  }
  0x20   : > { %s452_s7 = scalar_lea.vmem %s1640_s0, %s1070_s20  ;;  %s1329_s20 = smov 72  }
  0x21   : > { %v1476_v2 = vld [vmem:[%s452_s7] sm:$0xff]  ;;  %s1326_s7 = smov 96   ;;  %s1119_s23 = sshll.u32 %s1428_s29, 3 }
  0x22   : > { %v455_v3 = vpack.c.bf16 %v1476_v2, %v1476_v2 }
  0x23   : > { %626 = vmatpush.bf16.msrb.mxu0 %v617_v56 }
  0x24   : > { %1079 = vmatmul.msk.bf16.vlgmr.msra.gmra.mxu0 %vm476_vm0, %v455_v3 }
  0xa1   : > { %v489_v5 = vpop.f32.mrf.mxu0 }
  0xa2   : > { %v490_v6 = vadd.f32 %v1194_v4, %v489_v5 }
  0xa4   : > { %v1484_v7 = vpack.c.bf16 %v490_v6, %v490_v6 }
  0xa6   : > { %558 = vrot.lane.b32.xlu2 %v1484_v7, %s1325_s27  ;;  %499 = vrot.lane.b32.xlu0 %v1484_v7, %s1326_s7  ;;  %s1334_s27 = smov 104  }
  0xa9   : > { %v491_v8 = vpop.f32.mrf.mxu0 }
  0xae   : > { %556 = vrot.lane.b32.xlu2 %v1484_v7, %s1327_s17 }
  0xb6   : > { %653 = vrot.lane.b32.xlu2 %v1484_v7, %s1328_s16  ;;  %s1335_s16 = smov 48  }
  0xbe   : > { %730 = vrot.lane.b32.xlu2 %v1484_v7, %s1329_s20  ;;  %s446_s20 = sand.u32 1, %s1312_s26  }
  0xbf   : > { %s977_s22 = scalar_lea.sflag [#allocation4], %s446_s20 }
  0xc6   : > { %651 = vrot.lane.b32.xlu2 %v1484_v7, %s1330_s21  ;;  %s1069_s21 = sshll.u32 %s446_s20, 3 }
 0x100   : > { %v559_v9 = vpop.permute.xlu2 %558 }
 0x101   : > { %v564_v10 = vsel %vm501_vm1, %v559_v9, 0 }
 0x102   : > { %573 = vmatpush.bf16.xpose.msra.mxu3 %v564_v10 }
 0x108   : > { %v557_v11 = vpop.permute.xlu2 %556 }
 0x109   : > { %1082 = vmatmul.msk.bf16.vlgmr.msra.gmra.mxu3 %vm501_vm1, %v557_v11 }
 0x110   : > { %v654_v12 = vpop.permute.xlu2 %653 }
 0x111   : > { %v659_v13 = vsel %vm501_vm1, %v654_v12, 0 }
 0x112   : > { %668 = vmatpush.bf16.xpose.msrb.mxu3 %v659_v13 }
 0x118   : > { %v731_v15 = vpop.permute.xlu2 %730  ;;  %v500_v16 = vpop.permute.xlu0 %499 }
 0x119   : > { %v506_v18 = vsel %vm501_vm1, %v500_v16, 0  ;;  %v736_v20 = vsel %vm501_vm1, %v731_v15, 0 }
 0x11a   : > { %515 = vmatpush.bf16.xpose.msra.mxu1 %v506_v18 }
 0x120   : > { %v652_v19 = vpop.permute.xlu2 %651 }
 0x121   : > { %1080 = vmatmul.msk.bf16.vlgmr.msra.gmra.mxu1 %vm501_vm1, %v1484_v7  ;;  %1086 = vmatmul.msk.bf16.vlgmr.msrb.gmra.mxu3 %vm501_vm1, %v652_v19 }
 0x122   : > { %645 = vmatpush.bf16.msrb.mxu1 %v636_v17 }
 0x126   : > { %745 = vmatpush.bf16.xpose.msra.mxu1 %v736_v20 }
 0x18c   : > { %v575_v21 = vpop.f32.mrf.mxu3 }
 0x18d   : > { %v579_v22 = vsel %vm501_vm1, %v575_v21, -inf }
 0x18e   : > { %580 = vmax.xlane.f32.xlu2 %v579_v22  ;;  %v496_v22 = vld [vmem:[%s1621_s3 + $0xc] sm:$0xf] }
 0x194   : > { %v577_v23 = vpop.f32.mrf.mxu3 }
 0x19e   : > { %v517_v24 = vpop.f32.mrf.mxu1 }
 0x19f   : > { %v521_v25 = vsel %vm501_vm1, %v517_v24, -inf }
 0x1a0   : > { %522 = vmax.xlane.f32.xlu0 %v521_v25 }
 0x1a4   : > { %v1506_v26 = vpop.f32.mrf.mxu3 }
 0x1a5   : > { %v674_v28 = vsel %vm501_vm1, %v1506_v26, -inf }
 0x1a6   : > { %v519_v27 = vpop.f32.mrf.mxu1 }
 0x1a7   : > { %v789_v27 = vsel %vm538_vm2, %v496_v22, 0 }
 0x1a8   : > { %675 = vmax.xlane.f32.xlu0 %v674_v28 }
 0x1ac   : > { %v672_v29 = vpop.f32.mrf.mxu3 }
 0x201   : > { %v581_v30 = vpop.xlane.xlu2 %580 }
 0x202   : > { %v582_v31 = vsub.f32 %v575_v21, %v581_v30  ;;  %v495_v30 = vld [vmem:[%s1621_s3 + $0x8] sm:$0xf] }
 0x204   : > { %v583_v32 = vmul.f32 1.442695, %v582_v31  ;;  %v712_v31 = vsel %vm538_vm2, %v495_v30, 0 }
 0x205   : > { %721 = vmatpush.bf16.msra.mxu0 %v712_v31 }
 0x206   : > { %1202 = vpow2.f32 %v583_v32 }
 0x20c   : > { %v1203_v33 = vpop.eup %1202 }
 0x20d   : > { %v585_v34 = vsel %vm501_vm1, %v1203_v33, 0.0 }
 0x20e   : > { %586 = vadd.xlane.f32.xlu0 %v585_v34 }
 0x213   : > { %v523_v35 = vpop.xlane.xlu0 %522 }
 0x214   : > { %v524_v36 = vsub.f32 %v517_v24, %v523_v35 }
 0x216   : > { %v525_v37 = vmul.f32 1.442695, %v524_v36 }
 0x218   : > { %1204 = vpow2.f32 %v525_v37 }
 0x21b   : > { %v676_v40 = vpop.xlane.xlu0 %675 }
 0x21c   : > { %v677_v1 = vsub.f32 %v1506_v26, %v676_v40  ;;  %v1195_v40 = vld [vmem:[%s1622_s4] ss:$0 sm:$0xff] }
 0x21e   : > { %v1205_v38 = vpop.eup %1204  ;;  %v678_v4 = vmul.f32 1.442695, %v677_v1 }
 0x21f   : > { %v527_v39 = vsel %vm501_vm1, %v1205_v38, 0.0 }
 0x220   : > { %528 = vadd.xlane.f32.xlu1 %v527_v39 }
 0x222   : > { %591 = vrot.lane.b32.xlu0 %v1484_v7, %s1331_s24 }
 0x22a   : > { %763 = vrot.lane.b32.xlu0 %v1484_v7, %s1332_s30 }
 0x239   : > { %533 = vrot.lane.b32.xlu1 %v1484_v7, %s1333_s15 }
 0x241   : > { %728 = vrot.lane.b32.xlu1 %v1484_v7, %s1334_s27  ;;  %s987_s27 = scalar_lea.hbm %s1631_s13, %s1119_s23 }
 0x242   : > { %s991_s0 = sshll.u32 %s987_s27, 4  ;;  %s992_s0 = int_to_ptr.hbm [resolvable:$true] %s991_s0 }
 0x243   : > { %s1268_s24 = sshra.s32 %s992_s0, 4  ;;  %s1269_s24 = int_to_ptr.hbm [resolvable:$true] %s1268_s24 }
 0x244   : > { %s1270_s23 = scalar_lea.hbm %s1269_s24, 8  ;;  %p1275_p3 = scmp.lt.s32.totalorder %s1269_s24, %s1631_s13 }
 0x245   : > { %p1271_p0 = scmp.ne.s32.totalorder %s1269_s24, %s1270_s23 }
 0x247   : > { %p1272_p1 = pnand %p1271_p0, %p1445_p5 }
 0x249   : > { %p1273_p2 = pneg %p1272_p1 }
 0x281   : > { %v587_v41 = vpop.xlane.xlu0 %586 }
 0x293   : > { %v529_v45 = vpop.xlane.xlu1 %528 }
 0x294   : > { %v592_v42 = vpop.permute.xlu0 %591  ;;  %1206 = vrcp.f32 %v529_v45 }
 0x295   : > { %v597_v50 = vsel %vm538_vm2, %v592_v42, 0  ;;  %1208 = vrcp.f32 %v587_v41 }
 0x296   : > { %1210 = vpow2.f32 %v678_v4 }
 0x29a   : > { %v1207_v46 = vpop.eup %1206 }
 0x29b   : > { %v531_v47 = vmul.f32 %v1207_v46, %v1205_v38  ;;  %v1209_v52 = vpop.eup %1208 }
 0x29c   : > { %v764_v43 = vpop.permute.xlu0 %763  ;;  %v589_v53 = vmul.f32 %v1209_v52, %v1203_v33  ;;  %v1211_v10 = vpop.eup %1210 }
 0x29d   : > { %v769_v44 = vsel %vm538_vm2, %v764_v43, 0  ;;  %v532_v51 = vpack.c.bf16 %v531_v47, %v531_v47  ;;  %v680_v13 = vsel %vm501_vm1, %v1211_v10, 0.0 }
 0x29e   : > { %778 = vmatpush.bf16.msra.mxu3 %v769_v44  ;;  %v590_v54 = vpack.c.bf16 %v589_v53, %v589_v53 }
 0x2ab   : > { %v534_v48 = vpop.permute.xlu1 %533 }
 0x2ac   : > { %v540_v49 = vsel %vm538_vm2, %v534_v48, 0  ;;  %v1336_v48 = vmov 32.0  }
 0x2ad   : > { %549 = vmatpush.bf16.msra.mxu2 %v540_v49 }
 0x2b0   : > { %1081 = vmatmul.msk.bf16.vlgmr.msra.gmra.mxu2 %vm501_vm1, %v532_v51 }
 0x2b1   : > { %606 = vmatpush.bf16.msrb.mxu2 %v597_v50 }
 0x2b3   : > { %v729_v62 = vpop.permute.xlu1 %728 }
 0x2c0   : > { %1083 = vmatmul.msk.bf16.vlgmr.msrb.gmra.mxu2 %vm501_vm1, %v590_v54 }
 0x333   : > { %v551_v57 = vpop.f32.mrf.mxu2 }
 0x334   : > { %v555_v58 = vpack.c.bf16 %v551_v57, %v551_v57 }
 0x336   : > { %1085 = vmatmul.msk.bf16.vlgmr.msrb.gmra.mxu1 %vm501_vm1, %v555_v58 }
 0x33b   : > { %v553_v59 = vpop.f32.mrf.mxu2 }
 0x343   : > { %v608_v60 = vpop.f32.mrf.mxu2 }
 0x344   : > { %v612_v61 = vpack.c.bf16 %v608_v60, %v608_v60  ;;  %v1124_v60 = vld [vmem:[#allocation2] sm:$0xff] }
 0x346   : > { %1084 = vmatmul.msk.bf16.vlgmr.msrb.gmra.mxu0 %vm501_vm1, %v612_v61  ;;  %1089 = vmatmul.msk.bf16.vlgmr.msra.gmra.mxu1 %vm501_vm1, %v729_v62  ;;  %v1129_v61 = vld [vmem:[%s1627_s9 + $0x18] sm:$0xff] }
 0x347   : > { %933 = vmatpush.bf16.msrb.mxu1 %v1129_v61 }
 0x34b   : > { %v610_v63 = vpop.f32.mrf.mxu2 }
 0x3b3   : > { %v647_v0 = vpop.f32.mrf.mxu1 }
 0x3bb   : > { %v649_v3 = vpop.f32.mrf.mxu1 }
 0x3c3   : > { %v628_v5 = vpop.f32.mrf.mxu0  ;;  %v747_v6 = vpop.f32.mrf.mxu1 }
 0x3c4   : > { %v648_v8 = vadd.f32 %v647_v0, %v628_v5  ;;  %v751_v9 = vsel %vm501_vm1, %v747_v6, -inf  ;;  %v1128_v0 = vld [vmem:[%s1627_s9 + $0x10] sm:$0xff] }
 0x3c5   : > { %752 = vmax.xlane.f32.xlu1 %v751_v9  ;;  %934 = vmatpush.bf16.msrb.mxu1 %v1128_v0 }
 0x3cb   : > { %v630_v11 = vpop.f32.mrf.mxu0  ;;  %v749_v12 = vpop.f32.mrf.mxu1 }
 0x3cc   : > { %v1197_v12 = vld [vmem:[%s1624_s6] ss:$0 sm:$0xff] }
 0x3cd   : > { %681 = vadd.xlane.f32.xlu1 %v680_v13 }
 0x438   : > { %v753_v14 = vpop.xlane.xlu1 %752 }
 0x439   : > { %v754_v15 = vsub.f32 %v747_v6, %v753_v14 }
 0x43b   : > { %v755_v16 = vmul.f32 1.442695, %v754_v15 }
 0x43d   : > { %1212 = vpow2.f32 %v755_v16 }
 0x440   : > { %v682_v19 = vpop.xlane.xlu1 %681 }
 0x441   : > { %1214 = vrcp.f32 %v682_v19  ;;  %v1198_v19 = vld [vmem:[%s1626_s8] ss:$0 sm:$0xff] }
 0x443   : > { %v1213_v17 = vpop.eup %1212 }
 0x444   : > { %v757_v18 = vsel %vm501_vm1, %v1213_v17, 0.0 }
 0x445   : > { %758 = vadd.xlane.f32.xlu2 %v757_v18  ;;  %v1126_v18 = vld [vmem:[%s1627_s9] sm:$0xff] }
 0x447   : > { %v1215_v21 = vpop.eup %1214 }
 0x448   : > { %v684_v24 = vmul.f32 %v1215_v21, %v1211_v10  ;;  %v1196_v10 = vld [vmem:[%s1623_s5] ss:$0 sm:$0xff] }
 0x45d   : > { %686 = vrot.lane.b32.xlu2 %v1484_v7, %s1335_s16  ;;  %v685_v7 = vpack.c.bf16 %v684_v24, %v684_v24  ;;  %s448_s16 = scalar_lea.vmem [#allocation5], %s1069_s21  ;;  %s1274_s21 = scalar_lea.hbm %s1631_s13, 16 }
 0x45e   : > { %s989_s29 = sshll.u32 %s448_s16, 4  ;;  %p1276_p4 = scmp.lt.s32.totalorder %s1274_s21, %s1270_s23  ;;  %s990_s29 = int_to_ptr.vmem [resolvable:$true] %s989_s29 }
 0x460   : > { %p1277_p7 = por %p1276_p4, %p1275_p3 }
 0x462   : > { %p1278_p8 = pnand %p1277_p7, %p1273_p2 }
 0x4b8   : > { %v759_v20 = vpop.xlane.xlu2 %758 }
 0x4b9   : > { %1216 = vrcp.f32 %v759_v20 }
 0x4ba   : > { %1218 = vrcp.f32 %v1336_v48 }
 0x4bf   : > { %v1217_v23 = vpop.eup %1216 }
 0x4c0   : > { %v761_v25 = vmul.f32 %v1217_v23, %v1213_v17  ;;  %v687_v26 = vpop.permute.xlu2 %686  ;;  %v1219_v49 = vpop.eup %1218  ;;  %v1127_v17 = vld [vmem:[%s1627_s9 + $0x8] sm:$0xff] }
 0x4c1   : > { %v692_v28 = vsel %vm538_vm2, %v687_v26, 0  ;;  %v817_v50 = vmul.f32 32.0, %v1219_v49  ;;  %vm821_vm3 = vweird.f32 %v1219_v49  ;;  %935 = vmatpush.bf16.msrb.mxu1 %v1127_v17 }
 0x4c2   : > { %v762_v29 = vpack.c.bf16 %v761_v25, %v761_v25  ;;  %701 = vmatpush.bf16.msra.mxu2 %v692_v28  ;;  %v1199_v25 = vld [vmem:[%s1628_s10] ss:$0 sm:$0xff] }
 0x4c3   : > { %v818_v51 = vsub.f32 1.0, %v817_v50 }
 0x4c4   : > { %1090 = vmatmul.msk.bf16.vlgmr.msra.gmra.mxu3 %vm501_vm1, %v762_v29 }
 0x4c5   : > { %1087 = vmatmul.msk.bf16.vlgmr.msra.gmra.mxu2 %vm501_vm1, %v685_v7  ;;  %v819_v52 = vmul.f32 %v1219_v49, %v818_v51  ;;  %936 = vmatpush.bf16.msrb.mxu1 %v1126_v18 }
 0x4c6   : > { %798 = vmatpush.bf16.msrb.mxu2 %v789_v27 }
 0x4c7   : > { %v820_v53 = vadd.f32 %v1219_v49, %v819_v52 }
 0x4c9   : > { %v822_v54 = vsel %vm821_vm3, %v1219_v49, %v820_v53 }
 0x547   : > { %v780_v32 = vpop.f32.mrf.mxu3 }
 0x548   : > { %v784_v33 = vpack.c.bf16 %v780_v32, %v780_v32  ;;  %v703_v34 = vpop.f32.mrf.mxu2 }
 0x549   : > { %v707_v35 = vpack.c.bf16 %v703_v34, %v703_v34 }
 0x54a   : > { %1091 = vmatmul.msk.bf16.vlgmr.msrb.gmra.mxu2 %vm501_vm1, %v784_v33 }
 0x54b   : > { %1088 = vmatmul.msk.bf16.vlgmr.msra.gmra.mxu0 %vm501_vm1, %v707_v35 }
 0x54f   : > { %v782_v36 = vpop.f32.mrf.mxu3 }
 0x550   : > { %v705_v37 = vpop.f32.mrf.mxu2 }
 0x5c8   : > { %v723_v38 = vpop.f32.mrf.mxu0 }
 0x5c9   : > { %v727_v39 = vadd.f32 %v723_v38, %v648_v8 }
 0x5cd   : > { %v800_v41 = vpop.f32.mrf.mxu2 }
 0x5ce   : > { %v804_v42 = vadd.f32 %v800_v41, %v727_v39 }
 0x5d0   : > { %v809_v43 = vadd.f32 %v1195_v40, %v804_v42  ;;  %v725_v44 = vpop.f32.mrf.mxu0 }
 0x5d1   : > { %v1200_v44 = vld [vmem:[%s1629_s11] ss:$0 sm:$0xff] }
 0x5d2   : > { %v810_v45 = vadd.f32 %v809_v43, %v1476_v2  ;;  %v1125_v2 = vld [vmem:[#allocation2 + $0x8] sm:$0xff] }
 0x5d3   : > { %880 = vmatpush.bf16.msrb.mxu0 %v1125_v2 }
 0x5d4   : > { %v813_v46 = vsel %vm476_vm0, %v810_v45, 0.0 }
 0x5d5   : > { %v802_v47 = vpop.f32.mrf.mxu2  ;;  %814 = vadd.xlane.f32.xlu1 %v813_v46 }
 0x5d6   : > { %v1201_v47 = vld [vmem:[%s1630_s12] ss:$0 sm:$0xff] }
 0x5d7   : > { %881 = vmatpush.bf16.msrb.mxu0 %v1124_v60 }
 0x648   : > { %v815_v55 = vpop.xlane.xlu1 %814 }
 0x649   : > { %v823_v56 = vmul.f32 %v822_v54, %v815_v55 }
 0x64b   : > { %v824_v57 = vsub.f32 %v810_v45, %v823_v56 }
 0x64d   : > { %v825_v58 = vmul.f32 %v824_v57, %v824_v57 }
 0x64f   : > { %v826_v59 = vsel %vm476_vm0, %v825_v58, 0.0 }
 0x650   : > { %827 = vadd.xlane.f32.xlu0 %v826_v59 }
 0x6c3   : > { %v828_v62 = vpop.xlane.xlu0 %827 }
 0x6c4   : > { %v829_v63 = vmul.f32 %v828_v62, %v822_v54 }
 0x6c6   : > { %v830_v1 = vadd.f32 1e-05, %v829_v63 }
 0x6c8   : > { %1220 = vrsqrt.f32 %v830_v1  ;;  %vm837_vm5 = vweird.f32 %v830_v1 }
 0x6ce   : > { %v1221_v3 = vpop.eup %1220 }
 0x6cf   : > { %v832_v4 = vmul.f32 %v1221_v3, %v830_v1  ;;  %vm838_vm4 = vweird.f32 %v1221_v3 }
 0x6d0   : > { %vm839_vm6 = vmor %vm837_vm5, %vm838_vm4 }
 0x6d1   : > { %v833_v5 = vmul.f32 %v1221_v3, %v832_v4 }
 0x6d3   : > { %v834_v6 = vmul.f32 0.5, %v833_v5 }
 0x6d5   : > { %v835_v8 = vsub.f32 1.5, %v834_v6 }
 0x6d7   : > { %v836_v9 = vmul.f32 %v1221_v3, %v835_v8 }
 0x6d9   : > { %v840_v11 = vsel %vm839_vm6, %v1221_v3, %v836_v9 }
 0x6da   : > { %v841_v13 = vmul.f32 %v840_v11, %v824_v57 }
 0x6dc   : > { %v845_v14 = vmul.f32 %v1196_v10, %v841_v13 }
 0x6de   : > { %v849_v15 = vadd.f32 %v1197_v12, %v845_v14 }
 0x6e0   : > { %v850_v16 = vpack.c.bf16 %v849_v15, %v849_v15 }
 0x6e2   : > { %1100 = vmatmul.msk.bf16.vlgmr.msrb.gmra.mxu0 %vm476_vm0, %v850_v16 }
 0x75f   : > { %v883_v20 = vpop.f32.mrf.mxu0 }
 0x760   : > { %v884_v21 = vadd.f32 %v1198_v19, %v883_v20 }
 0x762   : > { %v887_v22 = vmax.f32 %v884_v21, 0.0 }
 0x764   : > { %v888_v23 = vpack.c.bf16 %v887_v22, %v887_v22 }
 0x766   : > { %1117 = vmatmul.msk.bf16.vlgmr.msrb.gmra.mxu1 %vm925_vm7, %v888_v23 }
 0x767   : > { %v885_v24 = vpop.f32.mrf.mxu0 }
 0x7e3   : > { %v938_v26 = vpop.f32.mrf.mxu1 }
 0x7e4   : > { %v939_v27 = vadd.f32 %v1199_v25, %v938_v26 }
 0x7e6   : > { %v942_v28 = vadd.f32 %v939_v27, %v849_v15 }
 0x7e8   : > { %v945_v29 = vsel %vm476_vm0, %v942_v28, 0.0 }
 0x7e9   : > { %946 = vadd.xlane.f32.xlu1 %v945_v29 }
 0x7eb   : > { %v940_v7 = vpop.f32.mrf.mxu1 }
 0x85c   : > { %v947_v30 = vpop.xlane.xlu1 %946 }
 0x85d   : > { %v948_v31 = vmul.f32 %v947_v30, %v822_v54 }
 0x85f   : > { %v949_v32 = vsub.f32 %v942_v28, %v948_v31 }
 0x861   : > { %v950_v33 = vmul.f32 %v949_v32, %v949_v32 }
 0x863   : > { %v951_v34 = vsel %vm476_vm0, %v950_v33, 0.0 }
 0x864   : > { %952 = vadd.xlane.f32.xlu1 %v951_v34 }
 0x8d7   : > { %v953_v35 = vpop.xlane.xlu1 %952 }
 0x8d8   : > { %v954_v36 = vmul.f32 %v953_v35, %v822_v54 }
 0x8da   : > { %v955_v37 = vadd.f32 1e-05, %v954_v36 }
 0x8dc   : > { %1222 = vrsqrt.f32 %v955_v37  ;;  %vm962_vm9 = vweird.f32 %v955_v37 }
 0x8e2   : > { %v1223_v38 = vpop.eup %1222 }
 0x8e3   : > { %v957_v39 = vmul.f32 %v1223_v38, %v955_v37  ;;  %vm963_vm8 = vweird.f32 %v1223_v38 }
 0x8e4   : > { %vm964_vm10 = vmor %vm962_vm9, %vm963_vm8 }
 0x8e5   : > { %v958_v40 = vmul.f32 %v1223_v38, %v957_v39 }
 0x8e7   : > { %v959_v41 = vmul.f32 0.5, %v958_v40 }
 0x8e9   : > { %v960_v42 = vsub.f32 1.5, %v959_v41 }
 0x8eb   : > { %v961_v43 = vmul.f32 %v1223_v38, %v960_v42 }
 0x8ed   : > { %v965_v45 = vsel %vm964_vm10, %v1223_v38, %v961_v43 }
 0x8ee   : > { %v966_v46 = vmul.f32 %v965_v45, %v949_v32 }
 0x8f0   : > { %v970_v48 = vmul.f32 %v1200_v44, %v966_v46 }
 0x8f2   : > { %v974_v49 = vadd.f32 %v1201_v47, %v970_v48 }
 0x8f4   : > { %975 = vst.msk [vmem:[%s448_s16] sm:$0xff] %vm476_vm0, %v974_v49 }
 0x8f5   : > { %1281 = shalt.err (!%p1278_p8)
}
 0x8f6   : > { %1134 = dma.vmem_to_hbm [thread:$0]  (%p1445_p5), %s990_s29, 128, %s992_s0, %s977_s22  }
 0x8f7 PF: > { %p1146_p9 = scmp.ge.s32.totalorder %s1320_s28, 2  ;;  %s1003_s20 = sand.u32 1, %s1308_s25  }
 0x8f8   : > { %s1004_s17 = scalar_lea.sflag [#allocation4], %s1003_s20 }
 0x8f9   : > { %p1141_p10 = pnand %p1146_p9, %p1449_p6 }
 0x8fb   : > { %p1142_p11 = pneg %p1141_p10 }
 0x8fd   : > { %1303 = dma.done.wait (%p1142_p11), %s1004_s17, 128  }
 0x8fe   : > { %1305 = vsyncadd (%p1142_p11), %s1004_s17, 4294967168  ;;  %s1641_s16 = sld [smem:[#allocation8_spill]]  ;;  %p24_p12 = scmp.ge.s32.totalorder %s1432_s14, 4  }
 0x8ff   : > { %s1642_s27 = sld [smem:[#allocation9_spill]]  ;;  %s1643_s25 = smov %s1312_s26 }
 0x900   : > { %s1645_s28 = smov %s1432_s14  ;;  %26 = sbr.rel (!%p24_p12) target bundleno = 7 (0x7), region = 112 }
 0x904   : > { %s1644_s26 = smov %s1641_s16 }
 0x905   :  { %1010 = vsyncpa [#allocation3], 1 }
 0x906   :  { %1012 = vsyncpa [#allocation3 + $0x1], 1 }
 0x907   :  { %1013 = vsyncpa [#allocation4], 1 }
 0x908   :  { %1015 = vsyncpa [#allocation4 + $0x1], 1 }

</bundles_post_ra>
